<compile_context>
chip_gen: v6e
topology: v6e:2x2x1
jax: 0.10.0
libtpu: 0.0.40
codegen_flags: <defaults>
</compile_context>

<pallas_src>
import jax
import jax.numpy as jnp
from jax.experimental import pallas as pl
from jax.experimental.pallas import tpu as pltpu

K = 7
PAD = (K - 1) // 2
BN_EPS = 1e-5

# Streaming-tile sizing (perf review): ~6 MiB x tiles push passes 1/3 toward the HBM roofline on
# v6e/v7x.  Pass 3 double-buffers both the x input and the output tile, peaking at ~24.5 MiB per
# step, which we make explicit with vmem_limit_bytes = 32 MiB (fits v7x's 64 MiB physical VMEM and
# raises v5e's 16 MiB scoped default).
_HW_TILE_CAP_ELEMS = 16384
_X_TILE_BUDGET_BYTES = 6 * 1024 * 1024
_VMEM_LIMIT_BYTES = 32 * 1024 * 1024


def _pick_hw_tile(hw):
    """Full H*W if it fits the cap, else the largest multiple of 128 dividing H*W."""
    if hw <= _HW_TILE_CAP_ELEMS:
        return hw
    t = (_HW_TILE_CAP_ELEMS // 128) * 128
    while t >= 128:
        if hw % t == 0:
            return t
        t -= 128
    return hw  # no lane-aligned divisor: stream whole rows (guarded by the VMEM check below)


def _pick_channel_tile(c, thw, itemsize):
    """Largest divisor of C — preferring native sublane-tile multiples (8/f32, 16/bf16, 32/int8)
    — whose x tile stays inside the per-step VMEM budget."""
    granule = max(8, 32 // itemsize)
    cap = max(1, _X_TILE_BUDGET_BYTES // (thw * itemsize))
    if c <= cap:
        return c
    t = (cap // granule) * granule
    while t >= granule:
        if c % t == 0:
            return t
        t -= granule
    t = min(cap, c)          # fall back to any divisor that fits
    while t > 1:
        if c % t == 0:
            return t
        t -= 1
    return 1


def _banded_conv_weights(conv_w, w_dim):
    """Pack (1,2,7,7) conv weights into a single [2*K*W, W] banded matrix so the whole 7x7 conv
    (dx via band truncation = implicit W-edge zero padding, dy & ci via lane-concatenated shifted
    slabs) becomes ONE MXU matmul per batch."""
    wgt = conv_w.reshape(2, K, K).astype(jnp.float32)      # [ci, dy, dx]
    wi = jnp.arange(w_dim)[:, None]                        # input column
    wo = jnp.arange(w_dim)[None, :]                        # output column
    dx = wi - wo + PAD                                     # tap index for (wi, wo)
    valid = (dx >= 0) & (dx < K)
    dx_c = jnp.clip(dx, 0, K - 1)
    band = jnp.where(valid[None, None], wgt[:, :, dx_c], 0.0)   # [2, K, W, W]
    return band.reshape(2 * K * w_dim, w_dim)                   # row = (ci*K + dy)*W + wi


@jax.jit
def spatial_gate(x, conv_w, gamma, beta):
    B, C, H, W = x.shape
    HW = H * W
    itemsize = jnp.dtype(x.dtype).itemsize
    thw = _pick_hw_tile(HW)
    tc = _pick_channel_tile(C, thw, itemsize)
    n_hw = HW // thw
    n_c = C // tc
    inv_c = 1.0 / C

    # Guard (review): never let a fallback tile silently blow past the VMEM limit.
    pass3_step_bytes = 4 * tc * thw * itemsize + 3 * thw * 4
    if pass3_step_bytes + (1 << 20) > _VMEM_LIMIT_BYTES:
        raise ValueError(
            f"SpatialGate tile ({tc} x {thw}) needs ~{pass3_step_bytes / 2**20:.1f} MiB VMEM per "
            f"grid step (> {_VMEM_LIMIT_BYTES / 2**20:.0f} MiB limit); this shape needs a padding "
            "path.")  # TODO(synk): pad H*W / C to a tileable size instead of erroring.

    # ------------------------------------------------------------------ pass 1: channel pool
    x_flat = x.reshape(B, C, HW)                 # lane-dense streaming view

    def pool_kernel(x_ref, pooled_ref):
        k = pl.program_id(2)                     # channel-tile (reduction) index, innermost
        xb = x_ref[...]                          # (1, tc, thw) in native dtype (no f32 copy)
        tile_max = jnp.max(xb, axis=1).astype(jnp.float32)      # (1, thw)
        tile_sum = jnp.sum(xb, axis=1, dtype=jnp.float32)       # (1, thw), f32 accumulation

        @pl.when(k == 0)
        def _init():
            pooled_ref[0, 0:1, :] = tile_max
            pooled_ref[0, 1:2, :] = tile_sum

        @pl.when(k > 0)
        def _accum():
            pooled_ref[0, 0:1, :] = jnp.maximum(pooled_ref[0, 0:1, :], tile_max)
            pooled_ref[0, 1:2, :] = pooled_ref[0, 1:2, :] + tile_sum

        @pl.when(k == pl.num_programs(2) - 1)
        def _finalize():
            pooled_ref[0, 1:2, :] = pooled_ref[0, 1:2, :] * inv_c   # sum -> mean

    pooled = pl.pallas_call(
        pool_kernel,
        out_shape=jax.ShapeDtypeStruct((B, 2, HW), jnp.float32),
        grid=(B, n_hw, n_c),
        in_specs=[pl.BlockSpec((1, tc, thw), lambda b, j, k: (b, k, j))],
        out_specs=pl.BlockSpec((1, 2, thw), lambda b, j, k: (b, 0, j)),
        compiler_params=pltpu.CompilerParams(
            dimension_semantics=("parallel", "parallel", "arbitrary"),
            vmem_limit_bytes=_VMEM_LIMIT_BYTES),
    )(x_flat)

    # -------------------------------------------------- pass 2: 7x7 conv, gridded per batch
    pooled4 = pooled.reshape(B, 2, H, W)                     # free reshape on a tiny array
    band = _banded_conv_weights(conv_w, W)                   # [2*K*W, W] packed banded weights

    def conv_kernel(band_ref, pooled_ref, conv_ref, pad_ref, lhs_ref):
        # Zero only the PAD-row borders, every step (scratch persists across the megacore-
        # sharded B grid so a b==0-only init would be unsafe); the interior is overwritten.
        zero_border = jnp.zeros((2, PAD, W), jnp.float32)
        pad_ref[:, 0:PAD, :] = zero_border
        pad_ref[:, PAD + H:PAD + H + PAD, :] = zero_border
        pad_ref[:, PAD:PAD + H, :] = pooled_ref[0]

        # Stage the 14 (ci, dy) shifted slabs side by side along lanes -> a single MXU matmul
        # accumulates all taps internally (no 13 extra result drains / full-tile VPU adds).
        for ci in range(2):
            for dy in range(K):
                col = (ci * K + dy) * W
                lhs_ref[:, col:col + W] = pad_ref[ci, dy:dy + H, :]
        conv_ref[0, 0] = jnp.dot(lhs_ref[...], band_ref[...],
                                 preferred_element_type=jnp.float32)

    conv_out = pl.pallas_call(
        conv_kernel,
        out_shape=jax.ShapeDtypeStruct((B, 1, H, W), jnp.float32),
        grid=(B,),
        in_specs=[
            pl.BlockSpec((2 * K * W, W), lambda b: (0, 0)),        # packed weights (resident)
            pl.BlockSpec((1, 2, H, W), lambda b: (b, 0, 0, 0)),    # pooled maps, per batch
        ],
        out_specs=pl.BlockSpec((1, 1, H, W), lambda b: (b, 0, 0, 0)),
        scratch_shapes=[pltpu.VMEM((2, H + 2 * PAD, W), jnp.float32),
                        pltpu.VMEM((H, 2 * K * W), jnp.float32)],
        compiler_params=pltpu.CompilerParams(
            dimension_semantics=("parallel",),
            vmem_limit_bytes=_VMEM_LIMIT_BYTES),
    )(band, pooled4)

    # Global BatchNorm2d(1) training-mode batch statistics + affine on the TINY conv output
    # (B*H*W elems — negligible next to the x traffic); this is the stats/apply split that lets
    # pass 2 stay gridded while preserving exact global-BN semantics.
    conv_flat = conv_out.reshape(B, 1, HW)
    mu = jnp.mean(conv_flat)
    var = jnp.mean((conv_flat - mu) ** 2)                    # biased variance (training-mode BN)
    y_flat = (conv_flat - mu) * (gamma / jnp.sqrt(var + BN_EPS)) + beta

    # ---------------------------------------------------------- pass 3: o = x * sigmoid(y)
    def rescale_kernel(y_ref, x_ref, o_ref, gate_ref):
        c = pl.program_id(2)

        @pl.when(c == 0)
        def _gate():
            # Exact sigmoid (review): computed once per (batch, hw-tile) into VMEM scratch and
            # reused across the whole channel loop (C axis is innermost / "arbitrary").
            gate_ref[...] = 1.0 / (1.0 + jnp.exp(-y_ref[...]))

        o_ref[...] = (x_ref[...] * gate_ref[...]).astype(o_ref.dtype)

    out_flat = pl.pallas_call(
        rescale_kernel,
        out_shape=jax.ShapeDtypeStruct((B, C, HW), x.dtype),
        grid=(B, n_hw, n_c),                    # C innermost: y/gate blocks stay VMEM-resident
        in_specs=[
            pl.BlockSpec((1, 1, thw), lambda b, j, c: (b, 0, j)),    # BN-affine conv output
            pl.BlockSpec((1, tc, thw), lambda b, j, c: (b, c, j)),   # x
        ],
        out_specs=pl.BlockSpec((1, tc, thw), lambda b, j, c: (b, c, j)),
        scratch_shapes=[pltpu.VMEM((1, 1, thw), jnp.float32)],
        # NOTE (review): no input_output_aliases — x is not donated at this jit boundary, so
        # aliasing would make XLA insert a defensive full copy of x (extra read+write of the
        # largest array on a purely bandwidth-bound pass).
        compiler_params=pltpu.CompilerParams(
            dimension_semantics=("parallel", "parallel", "arbitrary"),
            vmem_limit_bytes=_VMEM_LIMIT_BYTES),
    )(y_flat, x_flat)

    return out_flat.reshape(B, C, H, W)


def spatial_gate_ref(x, conv_w, gamma, beta):
    """Pure-JAX reference (mirrors the PyTorch forward)."""
    x_max = jnp.max(x, axis=1, keepdims=True)
    x_mean = jnp.mean(x, axis=1, keepdims=True)
    pooled = jnp.concatenate([x_max, x_mean], axis=1)                # [B,2,H,W]
    conv = jax.lax.conv_general_dilated(
        pooled, conv_w, window_strides=(1, 1),
        padding=[(PAD, PAD), (PAD, PAD)],
        dimension_numbers=("NCHW", "OIHW", "NCHW"))                  # [B,1,H,W]
    mu = jnp.mean(conv)
    var = jnp.mean((conv - mu) ** 2)
    y = (conv - mu) * gamma / jnp.sqrt(var + BN_EPS) + beta
    return x * (1.0 / (1.0 + jnp.exp(-y)))


if __name__ == "__main__":
    key = jax.random.PRNGKey(0)
    kx, kw = jax.random.split(key)

    B, C, H, W = 2, 4, 16, 16
    x = jax.random.normal(kx, (B, C, H, W), dtype=jnp.float32)

    # Conv2d(2,1,7,bias=False) default init: kaiming_uniform -> U(-1/sqrt(fan_in), 1/sqrt(fan_in))
    fan_in = 2 * K * K
    bound = 1.0 / (fan_in ** 0.5)
    conv_w = jax.random.uniform(kw, (1, 2, K, K), dtype=jnp.float32,
                                minval=-bound, maxval=bound)
    gamma = jnp.float32(1.0)   # BatchNorm2d affine init
    beta = jnp.float32(0.0)

    out = spatial_gate(x, conv_w, gamma, beta)
    out = jax.block_until_ready(out)

    ref = spatial_gate_ref(x, conv_w, gamma, beta)
    assert out.shape == (B, C, H, W)
    # Gate sigmoid is now exact; remaining slack covers only default-precision differences
    # between the in-kernel MXU dot and XLA's conv lowering for the 7x7 tap accumulation.
    assert jnp.allclose(out, ref, atol=2e-3, rtol=2e-3), "mismatch vs reference"

    print("KERNEL_OK")
</pallas_src>

<mosaic_0001>
module attributes {stable_mosaic.version = 11 : i64} {
  func.func @pool_kernel(%arg0: i32, %arg1: i32, %arg2: i32, %arg3: memref<1x4x256xf32, #tpu.memory_space<vmem>>, %arg4: memref<1x2x256xf32, #tpu.memory_space<vmem>>) attributes {dimension_semantics = [#tpu.dimension_semantics<parallel>, #tpu.dimension_semantics<parallel>, #tpu.dimension_semantics<arbitrary>], iteration_bounds = array<i64: 2, 1, 1>, scalar_prefetch = 0 : i64, scratch_operands = 0 : i64, tpu.core_type = #tpu.core_type<tc>, window_params = [{transform_indices = @transform_0, window_bounds = array<i64: 1, 4, 256>}, {transform_indices = @transform_1, window_bounds = array<i64: 1, 2, 256>}]} {
    %c0 = arith.constant 0 : index
    %c0_0 = arith.constant 0 : index
    %c0_1 = arith.constant 0 : index
    %0 = vector.load %arg3[%c0, %c0_0, %c0_1] : memref<1x4x256xf32, #tpu.memory_space<vmem>>, vector<1x4x256xf32>
    %cst = arith.constant dense<0xFF800000> : vector<1x256xf32>
    %1 = vector.multi_reduction <maximumf>, %0, %cst [1] : vector<1x4x256xf32> to vector<1x256xf32>
    %cst_2 = arith.constant dense<0.000000e+00> : vector<1x256xf32>
    %2 = vector.multi_reduction <add>, %0, %cst_2 [1] : vector<1x4x256xf32> to vector<1x256xf32>
    %c0_i32 = arith.constant 0 : i32
    %3 = arith.cmpi eq, %arg2, %c0_i32 : i32
    %4 = arith.extui %3 : i1 to i32
    %c0_i32_3 = arith.constant 0 : i32
    %5 = arith.cmpi ne, %4, %c0_i32_3 : i32
    scf.if %5 {
      %c0_8 = arith.constant 0 : index
      %c0_9 = arith.constant 0 : index
      %c0_10 = arith.constant 0 : index
      %12 = vector.load %arg4[%c0_8, %c0_9, %c0_10] : memref<1x2x256xf32, #tpu.memory_space<vmem>>, vector<1x1x256xf32>
      %13 = vector.shape_cast %12 : vector<1x1x256xf32> to vector<1x256xf32>
      %14 = vector.shape_cast %1 : vector<1x256xf32> to vector<1x1x256xf32>
      tpu.vector_store %arg4[%c0_8, %c0_9, %c0_10], %14 {strides = array<i32>} : memref<1x2x256xf32, #tpu.memory_space<vmem>>, vector<1x1x256xf32>,
      %c0_11 = arith.constant 0 : index
      %c1 = arith.constant 1 : index
      %c0_12 = arith.constant 0 : index
      %15 = vector.load %arg4[%c0_11, %c1, %c0_12] : memref<1x2x256xf32, #tpu.memory_space<vmem>>, vector<1x1x256xf32>
      %16 = vector.shape_cast %15 : vector<1x1x256xf32> to vector<1x256xf32>
      %17 = vector.shape_cast %2 : vector<1x256xf32> to vector<1x1x256xf32>
      tpu.vector_store %arg4[%c0_11, %c1, %c0_12], %17 {strides = array<i32>} : memref<1x2x256xf32, #tpu.memory_space<vmem>>, vector<1x1x256xf32>,
    } else {
    }
    %c0_i32_4 = arith.constant 0 : i32
    %6 = arith.cmpi sgt, %arg2, %c0_i32_4 : i32
    %7 = arith.extui %6 : i1 to i32
    %c0_i32_5 = arith.constant 0 : i32
    %8 = arith.cmpi ne, %7, %c0_i32_5 : i32
    scf.if %8 {
      %c0_8 = arith.constant 0 : index
      %c0_9 = arith.constant 0 : index
      %c0_10 = arith.constant 0 : index
      %12 = vector.load %arg4[%c0_8, %c0_9, %c0_10] : memref<1x2x256xf32, #tpu.memory_space<vmem>>, vector<1x1x256xf32>
      %13 = vector.shape_cast %12 : vector<1x1x256xf32> to vector<1x256xf32>
      %14 = arith.maximumf %13, %1 : vector<1x256xf32>
      %c0_11 = arith.constant 0 : index
      %c0_12 = arith.constant 0 : index
      %c0_13 = arith.constant 0 : index
      %15 = vector.load %arg4[%c0_11, %c0_12, %c0_13] : memref<1x2x256xf32, #tpu.memory_space<vmem>>, vector<1x1x256xf32>
      %16 = vector.shape_cast %15 : vector<1x1x256xf32> to vector<1x256xf32>
      %17 = vector.shape_cast %14 : vector<1x256xf32> to vector<1x1x256xf32>
      tpu.vector_store %arg4[%c0_11, %c0_12, %c0_13], %17 {strides = array<i32>} : memref<1x2x256xf32, #tpu.memory_space<vmem>>, vector<1x1x256xf32>,
      %c0_14 = arith.constant 0 : index
      %c1 = arith.constant 1 : index
      %c0_15 = arith.constant 0 : index
      %18 = vector.load %arg4[%c0_14, %c1, %c0_15] : memref<1x2x256xf32, #tpu.memory_space<vmem>>, vector<1x1x256xf32>
      %19 = vector.shape_cast %18 : vector<1x1x256xf32> to vector<1x256xf32>
      %20 = arith.addf %19, %2 : vector<1x256xf32>
      %c0_16 = arith.constant 0 : index
      %c1_17 = arith.constant 1 : index
      %c0_18 = arith.constant 0 : index
      %21 = vector.load %arg4[%c0_16, %c1_17, %c0_18] : memref<1x2x256xf32, #tpu.memory_space<vmem>>, vector<1x1x256xf32>
      %22 = vector.shape_cast %21 : vector<1x1x256xf32> to vector<1x256xf32>
      %23 = vector.shape_cast %20 : vector<1x256xf32> to vector<1x1x256xf32>
      tpu.vector_store %arg4[%c0_16, %c1_17, %c0_18], %23 {strides = array<i32>} : memref<1x2x256xf32, #tpu.memory_space<vmem>>, vector<1x1x256xf32>,
    } else {
    }
    %c0_i32_6 = arith.constant 0 : i32
    %9 = arith.cmpi eq, %arg2, %c0_i32_6 : i32
    %10 = arith.extui %9 : i1 to i32
    %c0_i32_7 = arith.constant 0 : i32
    %11 = arith.cmpi ne, %10, %c0_i32_7 : i32
    scf.if %11 {
      %c0_8 = arith.constant 0 : index
      %c1 = arith.constant 1 : index
      %c0_9 = arith.constant 0 : index
      %12 = vector.load %arg4[%c0_8, %c1, %c0_9] : memref<1x2x256xf32, #tpu.memory_space<vmem>>, vector<1x1x256xf32>
      %13 = vector.shape_cast %12 : vector<1x1x256xf32> to vector<1x256xf32>
      %cst_10 = arith.constant 2.500000e-01 : f32
      %14 = vector.broadcast %cst_10 : f32 to vector<1x256xf32>
      %15 = arith.mulf %13, %14 : vector<1x256xf32>
      %c0_11 = arith.constant 0 : index
      %c1_12 = arith.constant 1 : index
      %c0_13 = arith.constant 0 : index
      %16 = vector.load %arg4[%c0_11, %c1_12, %c0_13] : memref<1x2x256xf32, #tpu.memory_space<vmem>>, vector<1x1x256xf32>
      %17 = vector.shape_cast %16 : vector<1x1x256xf32> to vector<1x256xf32>
      %18 = vector.shape_cast %15 : vector<1x256xf32> to vector<1x1x256xf32>
      tpu.vector_store %arg4[%c0_11, %c1_12, %c0_13], %18 {strides = array<i32>} : memref<1x2x256xf32, #tpu.memory_space<vmem>>, vector<1x1x256xf32>,
    } else {
    }
    return
  }
  func.func @transform_0(%arg0: i32, %arg1: i32, %arg2: i32) -> (i32, i32, i32) {
    %c0_i32 = arith.constant 0 : i32
    return %arg0, %arg2, %arg1 : i32, i32, i32
  }
  func.func @transform_1(%arg0: i32, %arg1: i32, %arg2: i32) -> (i32, i32, i32) {
    %c0_i32 = arith.constant 0 : i32
    %c0_i32_0 = arith.constant 0 : i32
    return %arg0, %c0_i32, %arg1 : i32, i32, i32
  }
}

module attributes {stable_mosaic.version = 11 : i64} {
  func.func @conv_kernel(%arg0: i32, %arg1: memref<224x16xf32, #tpu.memory_space<vmem>>, %arg2: memref<1x2x16x16xf32, #tpu.memory_space<vmem>>, %arg3: memref<1x1x16x16xf32, #tpu.memory_space<vmem>>, %arg4: memref<2x22x16xf32, #tpu.memory_space<vmem>>, %arg5: memref<16x224xf32, #tpu.memory_space<vmem>>) attributes {dimension_semantics = [#tpu.dimension_semantics<parallel>], iteration_bounds = array<i64: 2>, scalar_prefetch = 0 : i64, scratch_operands = 2 : i64, tpu.core_type = #tpu.core_type<tc>, window_params = [{pipeline_mode = #tpu.pipeline_mode<synchronous>, transform_indices = @transform_0, window_bounds = array<i64: 224, 16>}, {transform_indices = @transform_1, window_bounds = array<i64: 1, 2, 16, 16>}, {transform_indices = @transform_2, window_bounds = array<i64: 1, 1, 16, 16>}]} {
    %cst = arith.constant 0.000000e+00 : f32
    %0 = vector.broadcast %cst : f32 to vector<2x3x16xf32>
    %c0 = arith.constant 0 : index
    %c0_0 = arith.constant 0 : index
    %c0_1 = arith.constant 0 : index
    %1 = vector.load %arg4[%c0, %c0_0, %c0_1] : memref<2x22x16xf32, #tpu.memory_space<vmem>>, vector<2x3x16xf32>
    tpu.vector_store %arg4[%c0, %c0_0, %c0_1], %0 {strides = array<i32>} : memref<2x22x16xf32, #tpu.memory_space<vmem>>, vector<2x3x16xf32>,
    %c0_2 = arith.constant 0 : index
    %c19 = arith.constant 19 : index
    %c0_3 = arith.constant 0 : index
    %2 = vector.load %arg4[%c0_2, %c19, %c0_3] : memref<2x22x16xf32, #tpu.memory_space<vmem>>, vector<2x3x16xf32>
    tpu.vector_store %arg4[%c0_2, %c19, %c0_3], %0 {strides = array<i32>} : memref<2x22x16xf32, #tpu.memory_space<vmem>>, vector<2x3x16xf32>,
    %c0_4 = arith.constant 0 : index
    %c0_5 = arith.constant 0 : index
    %c0_6 = arith.constant 0 : index
    %c0_7 = arith.constant 0 : index
    %3 = vector.load %arg2[%c0_4, %c0_5, %c0_6, %c0_7] : memref<1x2x16x16xf32, #tpu.memory_space<vmem>>, vector<1x2x16x16xf32>
    %4 = vector.shape_cast %3 : vector<1x2x16x16xf32> to vector<2x16x16xf32>
    %c0_8 = arith.constant 0 : index
    %c3 = arith.constant 3 : index
    %c0_9 = arith.constant 0 : index
    %5 = vector.load %arg4[%c0_8, %c3, %c0_9] : memref<2x22x16xf32, #tpu.memory_space<vmem>>, vector<2x16x16xf32>
    tpu.vector_store %arg4[%c0_8, %c3, %c0_9], %4 {strides = array<i32>} : memref<2x22x16xf32, #tpu.memory_space<vmem>>, vector<2x16x16xf32>,
    %c0_10 = arith.constant 0 : index
    %c0_11 = arith.constant 0 : index
    %c0_12 = arith.constant 0 : index
    %6 = vector.load %arg4[%c0_10, %c0_11, %c0_12] : memref<2x22x16xf32, #tpu.memory_space<vmem>>, vector<1x16x16xf32>
    %7 = vector.shape_cast %6 : vector<1x16x16xf32> to vector<16x16xf32>
    %c0_13 = arith.constant 0 : index
    %c0_14 = arith.constant 0 : index
    %8 = vector.load %arg5[%c0_13, %c0_14] : memref<16x224xf32, #tpu.memory_space<vmem>>, vector<16x16xf32>
    tpu.vector_store %arg5[%c0_13, %c0_14], %7 {strides = array<i32>} : memref<16x224xf32, #tpu.memory_space<vmem>>, vector<16x16xf32>,
    %c0_15 = arith.constant 0 : index
    %c1 = arith.constant 1 : index
    %c0_16 = arith.constant 0 : index
    %9 = vector.load %arg4[%c0_15, %c1, %c0_16] : memref<2x22x16xf32, #tpu.memory_space<vmem>>, vector<1x16x16xf32>
    %10 = vector.shape_cast %9 : vector<1x16x16xf32> to vector<16x16xf32>
    %c0_17 = arith.constant 0 : index
    %c16 = arith.constant 16 : index
    %11 = vector.load %arg5[%c0_17, %c16] : memref<16x224xf32, #tpu.memory_space<vmem>>, vector<16x16xf32>
    tpu.vector_store %arg5[%c0_17, %c16], %10 {strides = array<i32>} : memref<16x224xf32, #tpu.memory_space<vmem>>, vector<16x16xf32>,
    %c0_18 = arith.constant 0 : index
    %c2 = arith.constant 2 : index
    %c0_19 = arith.constant 0 : index
    %12 = vector.load %arg4[%c0_18, %c2, %c0_19] : memref<2x22x16xf32, #tpu.memory_space<vmem>>, vector<1x16x16xf32>
    %13 = vector.shape_cast %12 : vector<1x16x16xf32> to vector<16x16xf32>
    %c0_20 = arith.constant 0 : index
    %c32 = arith.constant 32 : index
    %14 = vector.load %arg5[%c0_20, %c32] : memref<16x224xf32, #tpu.memory_space<vmem>>, vector<16x16xf32>
    tpu.vector_store %arg5[%c0_20, %c32], %13 {strides = array<i32>} : memref<16x224xf32, #tpu.memory_space<vmem>>, vector<16x16xf32>,
    %c0_21 = arith.constant 0 : index
    %c3_22 = arith.constant 3 : index
    %c0_23 = arith.constant 0 : index
    %15 = vector.load %arg4[%c0_21, %c3_22, %c0_23] : memref<2x22x16xf32, #tpu.memory_space<vmem>>, vector<1x16x16xf32>
    %16 = vector.shape_cast %15 : vector<1x16x16xf32> to vector<16x16xf32>
    %c0_24 = arith.constant 0 : index
    %c48 = arith.constant 48 : index
    %17 = vector.load %arg5[%c0_24, %c48] : memref<16x224xf32, #tpu.memory_space<vmem>>, vector<16x16xf32>
    tpu.vector_store %arg5[%c0_24, %c48], %16 {strides = array<i32>} : memref<16x224xf32, #tpu.memory_space<vmem>>, vector<16x16xf32>,
    %c0_25 = arith.constant 0 : index
    %c4 = arith.constant 4 : index
    %c0_26 = arith.constant 0 : index
    %18 = vector.load %arg4[%c0_25, %c4, %c0_26] : memref<2x22x16xf32, #tpu.memory_space<vmem>>, vector<1x16x16xf32>
    %19 = vector.shape_cast %18 : vector<1x16x16xf32> to vector<16x16xf32>
    %c0_27 = arith.constant 0 : index
    %c64 = arith.constant 64 : index
    %20 = vector.load %arg5[%c0_27, %c64] : memref<16x224xf32, #tpu.memory_space<vmem>>, vector<16x16xf32>
    tpu.vector_store %arg5[%c0_27, %c64], %19 {strides = array<i32>} : memref<16x224xf32, #tpu.memory_space<vmem>>, vector<16x16xf32>,
    %c0_28 = arith.constant 0 : index
    %c5 = arith.constant 5 : index
    %c0_29 = arith.constant 0 : index
    %21 = vector.load %arg4[%c0_28, %c5, %c0_29] : memref<2x22x16xf32, #tpu.memory_space<vmem>>, vector<1x16x16xf32>
    %22 = vector.shape_cast %21 : vector<1x16x16xf32> to vector<16x16xf32>
    %c0_30 = arith.constant 0 : index
    %c80 = arith.constant 80 : index
    %23 = vector.load %arg5[%c0_30, %c80] : memref<16x224xf32, #tpu.memory_space<vmem>>, vector<16x16xf32>
    tpu.vector_store %arg5[%c0_30, %c80], %22 {strides = array<i32>} : memref<16x224xf32, #tpu.memory_space<vmem>>, vector<16x16xf32>,
    %c0_31 = arith.constant 0 : index
    %c6 = arith.constant 6 : index
    %c0_32 = arith.constant 0 : index
    %24 = vector.load %arg4[%c0_31, %c6, %c0_32] : memref<2x22x16xf32, #tpu.memory_space<vmem>>, vector<1x16x16xf32>
    %25 = vector.shape_cast %24 : vector<1x16x16xf32> to vector<16x16xf32>
    %c0_33 = arith.constant 0 : index
    %c96 = arith.constant 96 : index
    %26 = vector.load %arg5[%c0_33, %c96] : memref<16x224xf32, #tpu.memory_space<vmem>>, vector<16x16xf32>
    tpu.vector_store %arg5[%c0_33, %c96], %25 {strides = array<i32>} : memref<16x224xf32, #tpu.memory_space<vmem>>, vector<16x16xf32>,
    %c1_34 = arith.constant 1 : index
    %c0_35 = arith.constant 0 : index
    %c0_36 = arith.constant 0 : index
    %27 = vector.load %arg4[%c1_34, %c0_35, %c0_36] : memref<2x22x16xf32, #tpu.memory_space<vmem>>, vector<1x16x16xf32>
    %28 = vector.shape_cast %27 : vector<1x16x16xf32> to vector<16x16xf32>
    %c0_37 = arith.constant 0 : index
    %c112 = arith.constant 112 : index
    %29 = vector.load %arg5[%c0_37, %c112] : memref<16x224xf32, #tpu.memory_space<vmem>>, vector<16x16xf32>
    tpu.vector_store %arg5[%c0_37, %c112], %28 {strides = array<i32>} : memref<16x224xf32, #tpu.memory_space<vmem>>, vector<16x16xf32>,
    %c1_38 = arith.constant 1 : index
    %c1_39 = arith.constant 1 : index
    %c0_40 = arith.constant 0 : index
    %30 = vector.load %arg4[%c1_38, %c1_39, %c0_40] : memref<2x22x16xf32, #tpu.memory_space<vmem>>, vector<1x16x16xf32>
    %31 = vector.shape_cast %30 : vector<1x16x16xf32> to vector<16x16xf32>
    %c0_41 = arith.constant 0 : index
    %c128 = arith.constant 128 : index
    %32 = vector.load %arg5[%c0_41, %c128] : memref<16x224xf32, #tpu.memory_space<vmem>>, vector<16x16xf32>
    tpu.vector_store %arg5[%c0_41, %c128], %31 {strides = array<i32>} : memref<16x224xf32, #tpu.memory_space<vmem>>, vector<16x16xf32>,
    %c1_42 = arith.constant 1 : index
    %c2_43 = arith.constant 2 : index
    %c0_44 = arith.constant 0 : index
    %33 = vector.load %arg4[%c1_42, %c2_43, %c0_44] : memref<2x22x16xf32, #tpu.memory_space<vmem>>, vector<1x16x16xf32>
    %34 = vector.shape_cast %33 : vector<1x16x16xf32> to vector<16x16xf32>
    %c0_45 = arith.constant 0 : index
    %c144 = arith.constant 144 : index
    %35 = vector.load %arg5[%c0_45, %c144] : memref<16x224xf32, #tpu.memory_space<vmem>>, vector<16x16xf32>
    tpu.vector_store %arg5[%c0_45, %c144], %34 {strides = array<i32>} : memref<16x224xf32, #tpu.memory_space<vmem>>, vector<16x16xf32>,
    %c1_46 = arith.constant 1 : index
    %c3_47 = arith.constant 3 : index
    %c0_48 = arith.constant 0 : index
    %36 = vector.load %arg4[%c1_46, %c3_47, %c0_48] : memref<2x22x16xf32, #tpu.memory_space<vmem>>, vector<1x16x16xf32>
    %37 = vector.shape_cast %36 : vector<1x16x16xf32> to vector<16x16xf32>
    %c0_49 = arith.constant 0 : index
    %c160 = arith.constant 160 : index
    %38 = vector.load %arg5[%c0_49, %c160] : memref<16x224xf32, #tpu.memory_space<vmem>>, vector<16x16xf32>
    tpu.vector_store %arg5[%c0_49, %c160], %37 {strides = array<i32>} : memref<16x224xf32, #tpu.memory_space<vmem>>, vector<16x16xf32>,
    %c1_50 = arith.constant 1 : index
    %c4_51 = arith.constant 4 : index
    %c0_52 = arith.constant 0 : index
    %39 = vector.load %arg4[%c1_50, %c4_51, %c0_52] : memref<2x22x16xf32, #tpu.memory_space<vmem>>, vector<1x16x16xf32>
    %40 = vector.shape_cast %39 : vector<1x16x16xf32> to vector<16x16xf32>
    %c0_53 = arith.constant 0 : index
    %c176 = arith.constant 176 : index
    %41 = vector.load %arg5[%c0_53, %c176] : memref<16x224xf32, #tpu.memory_space<vmem>>, vector<16x16xf32>
    tpu.vector_store %arg5[%c0_53, %c176], %40 {strides = array<i32>} : memref<16x224xf32, #tpu.memory_space<vmem>>, vector<16x16xf32>,
    %c1_54 = arith.constant 1 : index
    %c5_55 = arith.constant 5 : index
    %c0_56 = arith.constant 0 : index
    %42 = vector.load %arg4[%c1_54, %c5_55, %c0_56] : memref<2x22x16xf32, #tpu.memory_space<vmem>>, vector<1x16x16xf32>
    %43 = vector.shape_cast %42 : vector<1x16x16xf32> to vector<16x16xf32>
    %c0_57 = arith.constant 0 : index
    %c192 = arith.constant 192 : index
    %44 = vector.load %arg5[%c0_57, %c192] : memref<16x224xf32, #tpu.memory_space<vmem>>, vector<16x16xf32>
    tpu.vector_store %arg5[%c0_57, %c192], %43 {strides = array<i32>} : memref<16x224xf32, #tpu.memory_space<vmem>>, vector<16x16xf32>,
    %c1_58 = arith.constant 1 : index
    %c6_59 = arith.constant 6 : index
    %c0_60 = arith.constant 0 : index
    %45 = vector.load %arg4[%c1_58, %c6_59, %c0_60] : memref<2x22x16xf32, #tpu.memory_space<vmem>>, vector<1x16x16xf32>
    %46 = vector.shape_cast %45 : vector<1x16x16xf32> to vector<16x16xf32>
    %c0_61 = arith.constant 0 : index
    %c208 = arith.constant 208 : index
    %47 = vector.load %arg5[%c0_61, %c208] : memref<16x224xf32, #tpu.memory_space<vmem>>, vector<16x16xf32>
    tpu.vector_store %arg5[%c0_61, %c208], %46 {strides = array<i32>} : memref<16x224xf32, #tpu.memory_space<vmem>>, vector<16x16xf32>,
    %c0_62 = arith.constant 0 : index
    %c0_63 = arith.constant 0 : index
    %48 = vector.load %arg5[%c0_62, %c0_63] : memref<16x224xf32, #tpu.memory_space<vmem>>, vector<16x224xf32>
    %c0_64 = arith.constant 0 : index
    %c0_65 = arith.constant 0 : index
    %49 = vector.load %arg1[%c0_64, %c0_65] : memref<224x16xf32, #tpu.memory_space<vmem>>, vector<224x16xf32>
    %cst_66 = arith.constant dense<0.000000e+00> : vector<16x16xf32>
    %50 = tpu.matmul %48, %49, %cst_66 {dimension_numbers = #tpu.dot_dimension_numbers<[1], [0], [0], [1], [0, 0, 1, 1], [], []>} : vector<16x224xf32>, vector<224x16xf32>, vector<16x16xf32> -> vector<16x16xf32>
    %c0_67 = arith.constant 0 : index
    %c0_68 = arith.constant 0 : index
    %c0_69 = arith.constant 0 : index
    %c0_70 = arith.constant 0 : index
    %51 = vector.load %arg3[%c0_67, %c0_68, %c0_69, %c0_70] : memref<1x1x16x16xf32, #tpu.memory_space<vmem>>, vector<1x1x16x16xf32>
    %52 = vector.shape_cast %51 : vector<1x1x16x16xf32> to vector<16x16xf32>
    %53 = vector.shape_cast %50 : vector<16x16xf32> to vector<1x1x16x16xf32>
    tpu.vector_store %arg3[%c0_67, %c0_68, %c0_69, %c0_70], %53 {strides = array<i32>} : memref<1x1x16x16xf32, #tpu.memory_space<vmem>>, vector<1x1x16x16xf32>,
    return
  }
  func.func @transform_0(%arg0: i32) -> (i32, i32) {
    %c0_i32 = arith.constant 0 : i32
    %c0_i32_0 = arith.constant 0 : i32
    %c0_i32_1 = arith.constant 0 : i32
    return %c0_i32, %c0_i32_0 : i32, i32
  }
  func.func @transform_1(%arg0: i32) -> (i32, i32, i32, i32) {
    %c0_i32 = arith.constant 0 : i32
    %c0_i32_0 = arith.constant 0 : i32
    %c0_i32_1 = arith.constant 0 : i32
    %c0_i32_2 = arith.constant 0 : i32
    return %arg0, %c0_i32, %c0_i32_0, %c0_i32_1 : i32, i32, i32, i32
  }
  func.func @transform_2(%arg0: i32) -> (i32, i32, i32, i32) {
    %c0_i32 = arith.constant 0 : i32
    %c0_i32_0 = arith.constant 0 : i32
    %c0_i32_1 = arith.constant 0 : i32
    %c0_i32_2 = arith.constant 0 : i32
    return %arg0, %c0_i32, %c0_i32_0, %c0_i32_1 : i32, i32, i32, i32
  }
}

module attributes {stable_mosaic.version = 11 : i64} {
  func.func @rescale_kernel(%arg0: i32, %arg1: i32, %arg2: i32, %arg3: memref<1x1x256xf32, #tpu.memory_space<vmem>>, %arg4: memref<1x4x256xf32, #tpu.memory_space<vmem>>, %arg5: memref<1x4x256xf32, #tpu.memory_space<vmem>>, %arg6: memref<1x1x256xf32, #tpu.memory_space<vmem>>) attributes {dimension_semantics = [#tpu.dimension_semantics<parallel>, #tpu.dimension_semantics<parallel>, #tpu.dimension_semantics<arbitrary>], iteration_bounds = array<i64: 2, 1, 1>, scalar_prefetch = 0 : i64, scratch_operands = 1 : i64, tpu.core_type = #tpu.core_type<tc>, window_params = [{transform_indices = @transform_0, window_bounds = array<i64: 1, 1, 256>}, {transform_indices = @transform_1, window_bounds = array<i64: 1, 4, 256>}, {transform_indices = @transform_2, window_bounds = array<i64: 1, 4, 256>}]} {
    %c0_i32 = arith.constant 0 : i32
    %0 = arith.cmpi eq, %arg2, %c0_i32 : i32
    %1 = arith.extui %0 : i1 to i32
    %c0_i32_0 = arith.constant 0 : i32
    %2 = arith.cmpi ne, %1, %c0_i32_0 : i32
    scf.if %2 {
      %c0_9 = arith.constant 0 : index
      %c0_10 = arith.constant 0 : index
      %c0_11 = arith.constant 0 : index
      %8 = vector.load %arg3[%c0_9, %c0_10, %c0_11] : memref<1x1x256xf32, #tpu.memory_space<vmem>>, vector<1x1x256xf32>
      %cst = arith.constant 0.000000e+00 : f32
      %9 = vector.broadcast %cst : f32 to vector<1x1x256xf32>
      %10 = arith.subf %9, %8 : vector<1x1x256xf32>
      %11 = math.exp %10 : vector<1x1x256xf32>
      %cst_12 = arith.constant 1.000000e+00 : f32
      %12 = vector.broadcast %cst_12 : f32 to vector<1x1x256xf32>
      %13 = arith.addf %12, %11 : vector<1x1x256xf32>
      %cst_13 = arith.constant 1.000000e+00 : f32
      %14 = vector.broadcast %cst_13 : f32 to vector<1x1x256xf32>
      %15 = arith.divf %14, %13 : vector<1x1x256xf32>
      %c0_14 = arith.constant 0 : index
      %c0_15 = arith.constant 0 : index
      %c0_16 = arith.constant 0 : index
      %16 = vector.load %arg6[%c0_14, %c0_15, %c0_16] : memref<1x1x256xf32, #tpu.memory_space<vmem>>, vector<1x1x256xf32>
      tpu.vector_store %arg6[%c0_14, %c0_15, %c0_16], %15 {strides = array<i32>} : memref<1x1x256xf32, #tpu.memory_space<vmem>>, vector<1x1x256xf32>,
    } else {
    }
    %c0 = arith.constant 0 : index
    %c0_1 = arith.constant 0 : index
    %c0_2 = arith.constant 0 : index
    %3 = vector.load %arg4[%c0, %c0_1, %c0_2] : memref<1x4x256xf32, #tpu.memory_space<vmem>>, vector<1x4x256xf32>
    %c0_3 = arith.constant 0 : index
    %c0_4 = arith.constant 0 : index
    %c0_5 = arith.constant 0 : index
    %4 = vector.load %arg6[%c0_3, %c0_4, %c0_5] : memref<1x1x256xf32, #tpu.memory_space<vmem>>, vector<1x1x256xf32>
    %5 = vector.broadcast %4 : vector<1x1x256xf32> to vector<1x4x256xf32>
    %6 = arith.mulf %3, %5 : vector<1x4x256xf32>
    %c0_6 = arith.constant 0 : index
    %c0_7 = arith.constant 0 : index
    %c0_8 = arith.constant 0 : index
    %7 = vector.load %arg5[%c0_6, %c0_7, %c0_8] : memref<1x4x256xf32, #tpu.memory_space<vmem>>, vector<1x4x256xf32>
    tpu.vector_store %arg5[%c0_6, %c0_7, %c0_8], %6 {strides = array<i32>} : memref<1x4x256xf32, #tpu.memory_space<vmem>>, vector<1x4x256xf32>,
    return
  }
  func.func @transform_0(%arg0: i32, %arg1: i32, %arg2: i32) -> (i32, i32, i32) {
    %c0_i32 = arith.constant 0 : i32
    %c0_i32_0 = arith.constant 0 : i32
    return %arg0, %c0_i32, %arg1 : i32, i32, i32
  }
  func.func @transform_1(%arg0: i32, %arg1: i32, %arg2: i32) -> (i32, i32, i32) {
    %c0_i32 = arith.constant 0 : i32
    return %arg0, %arg2, %arg1 : i32, i32, i32
  }
  func.func @transform_2(%arg0: i32, %arg1: i32, %arg2: i32) -> (i32, i32, i32) {
    %c0_i32 = arith.constant 0 : i32
    return %arg0, %arg2, %arg1 : i32, i32, i32
  }
}

</mosaic_0001>

<bundles_post_ra>
// kernel: spatial_gate.3
= control target key start
LH: loop header
LB: loop body
LE: loop exit
PB: predicated region body
PF: predicated region fallthrough
CT: control target
= control target key end

     0   :  { %s494_s6 = smov 0   ;;  %s496_s7 = smov 0   ;;  %s531_s0 = inlined_call_operand.vmem [shape: f32[2,4,256], index: 0, kind: input, shape index: {}]   ;;  %s532_s1 = inlined_call_operand.vmem [shape: f32[2,2,256], index: 1, kind: output, shape index: {}]  }
   0x1   :  { %s498_s8 = smov 0  }
   0x2 LB: > { %s30_s9 = sadd.s32 1, %s477_s7  ;;  %p419_p0 = scmp.ge.s32.totalorder %s481_s8, 1  ;;  %s481_s8 = sphi %s498_s8, %s11_s8   ;;  %s477_s7 = sphi %s496_s7, %s534_s7   ;;  %s473_s6 = sphi %s494_s6, %s533_s6  }
   0x3   : > { %p32_p1 = scmp.ge.s32.totalorder %s30_s9, 2  ;;  %p121_p2 = scmp.lt.s32.totalorder %s481_s8, 3 }
   0x5   : > { %s536_s9 = smov (%p32_p1, %s30_s9), 0  ;;  %p122_p3 = pnand %p419_p0, %p121_p2 }
   0x6   : > { %p154_p4 = scmp.lt.s32.totalorder (!%p122_p3), %s473_s6, 1 }
   0x7   : > { %125 = sbr.rel (%p122_p3) target bundleno = 48 (0x30), region = 24 }
   0xc   : > { %s538_s6 = smov (!%p154_p4, %s473_s6), 1  ;;  %vm181_vm0 = vcmask 1043456   ;;  %v483_v12 = vmov 1966171168   ;;  %v220_v14 = vlaneseq }
   0xd   : > { %s431_s10 = sshll.u32 %s538_s6, 3  ;;  %v218_v13 = vunpack.c.l.s4 %v483_v12  ;;  %s432_s14 = sshll.u32 %s538_s6, 2 }
   0xe   : > { %s165_s13 = scalar_lea.vmem %s531_s0, %s431_s10  ;;  %v221_v24 = vshrl.u32 %v220_v14, 7  ;;  %s175_s17 = scalar_lea.vmem %s532_s1, %s432_s14  ;;  %vm234_vm1 = vcmp.lt.s32.totalorder %v220_v14, 256 }
   0xf   : > { %v177_v0 = vld [vmem:[%s165_s13] sm:$0xff]  ;;  %v219_v23 = vunpack.c.0.s8 %v218_v13 }
  0x10   : > { %v179_v1 = vcombine.high %v177_v0, %v177_v0  ;;  %v182_v2 = vsel %vm181_vm0, %v177_v0, -inf  ;;  %v196_v3 = vsel %vm181_vm0, %v177_v0, 0.0 }
  0x11   : > { %v183_v4 = vrot.slane %v182_v2, 4  ;;  %v197_v5 = vrot.slane %v196_v3, 4  ;;  %v222_v34 = vsub.s32 %v219_v23, %v221_v24 }
  0x12   : > { %v189_v6 = vsel %vm181_vm0, %v179_v1, -inf  ;;  %v203_v7 = vsel %vm181_vm0, %v179_v1, 0.0 }
  0x13   : > { %v184_v8 = vmax.f32 %v182_v2, %v183_v4  ;;  %v190_v9 = vrot.slane %v189_v6, 4  ;;  %v198_v10 = vadd.f32 %v197_v5, %v196_v3  ;;  %v204_v11 = vrot.slane %v203_v7, 4 }
  0x15   : > { %v185_v15 = vrot.slane %v184_v8, 2  ;;  %v191_v16 = vmax.f32 %v189_v6, %v190_v9  ;;  %v199_v17 = vrot.slane %v198_v10, 2  ;;  %v205_v18 = vadd.f32 %v204_v11, %v203_v7 }
  0x17   : > { %v200_v19 = vadd.f32 %v199_v17, %v198_v10  ;;  %v206_v20 = vrot.slane %v205_v18, 2  ;;  %v186_v21 = vmax.f32 %v184_v8, %v185_v15  ;;  %v192_v22 = vrot.slane %v191_v16, 2 }
  0x19   : > { %v201_v25 = vrot.slane %v200_v19, 1  ;;  %v207_v26 = vadd.f32 %v206_v20, %v205_v18  ;;  %v187_v27 = vrot.slane %v186_v21, 1  ;;  %v193_v28 = vmax.f32 %v191_v16, %v192_v22 }
  0x1b   : > { %v202_v29 = vadd.f32 %v201_v25, %v200_v19  ;;  %v208_v30 = vrot.slane %v207_v26, 1  ;;  %v188_v31 = vmax.f32 %v186_v21, %v187_v27  ;;  %v194_v32 = vrot.slane %v193_v28, 1 }
  0x1d   : > { %v209_v33 = vadd.f32 %v208_v30, %v207_v26  ;;  %v195_v35 = vmax.f32 %v193_v28, %v194_v32 }
  0x1f   : > { %v239_v36 = vcombine.low %v202_v29, %v209_v33  ;;  %v216_v37 = vcombine.low %v188_v31, %v195_v35 }
  0x21   : > { %v246_v38 = vrot.slane %v239_v36, %v222_v34  ;;  %v223_v39 = vrot.slane %v216_v37, %v222_v34 }
  0x23   : > { %v253_v40 = vrot.slane %v246_v38, %v222_v34  ;;  %v230_v41 = vrot.slane %v223_v39, %v222_v34 }
  0x25   : > { %424 = vst.msk [vmem:[%s175_s17 + $0x1] ss:$2 sm:$0x3] %vm234_vm1, %v253_v40  ;;  %236 = vst.msk [vmem:[%s175_s17] ss:$2 sm:$0x3] %vm234_vm1, %v230_v41 }
  0x2c   : > { %v427_v42 = vld [vmem:[%s175_s17 + $0x1] ss:$2 sm:$0x3] }
  0x2d   : > { %v313_v43 = vmul.f32 0.25, %v427_v42 }
  0x2f   : > { %428 = vst.msk [vmem:[%s175_s17 + $0x1] ss:$2 sm:$0x3] %vm234_vm1, %v313_v43 }
  0x30 PF: > { %s11_s8 = sadd.s32 1, %s481_s8   ;;  %s533_s6 = smov %s477_s7 }
  0x31   : > { %p8_p5 = scmp.ge.s32.totalorder %s11_s8, 4   ;;  %s534_s7 = smov %s536_s9 }
  0x33   :  { %10 = sbr.rel (!%p8_p5) target bundleno = 2 (0x2), region = 69 }

// kernel: spatial_gate.4
= control target key start
LH: loop header
LB: loop body
LE: loop exit
PB: predicated region body
PF: predicated region fallthrough
CT: control target
= control target key end

     0   :  { %s607_s9 = smov 0   ;;  %s814_s0 = inlined_call_operand.vmem [shape: f32[224,16], index: 0, kind: input, shape index: {}]   ;;  %s815_s1 = inlined_call_operand.vmem [shape: f32[2,2,16,16], index: 1, kind: input, shape index: {}]   ;;  %s816_s2 = inlined_call_operand.vmem [shape: f32[2,1,16,16], index: 2, kind: output, shape index: {}]  }
   0x1 LB: > { %s489_s10 = sadd.s32 4294967295, %s582_s9   ;;  %p493_p0 = scmp.ge.s32.totalorder %s582_s9, 1  ;;  %s582_s9 = sphi %s607_s9, %s12_s9  }
   0x2   : > { %p112_p1 = scmp.lt.s32.totalorder %s582_s9, 3 }
   0x4   : > { %p113_p2 = pnand %p493_p0, %p112_p1 }
   0x5   : > { %p134_p3 = scmp.lt.s32.totalorder (!%p113_p2), %s489_s10, 1  ;;  %s585_s3 = smov (!%p113_p2), 32  }
   0x6   : > { %116 = sbr.rel (%p113_p2) target bundleno = 388 (0x184), region = 28  ;;  %s586_s4 = smov (!%p113_p2), 16  }
   0x7   : > { %s587_s13 = smov (!%p113_p2), 48   ;;  %s589_s27 = smov (!%p113_p2), 80  }
   0x8   : > { %s590_s6 = smov (!%p113_p2), 96   ;;  %s591_s15 = smov (!%p113_p2), 112  }
   0xb   : > { %vm144_vm0 = vcmask 124928   ;;  %v337_v0 = vld [vmem:[%s814_s0 + $0x78] sm:$0xff]  ;;  %v584_v1 = vmov 0.0   ;;  %v336_v2 = vld [vmem:[%s814_s0 + $0x70] sm:$0xff]  ;;  %s818_s10 = smov (!%p134_p3, %s489_s10), 1  ;;  %v335_v3 = vld [vmem:[%s814_s0 + $0x68] sm:$0xff] }
   0xc   : > { %145 = vst.msk [vmem:[#allocation2] sm:$0x7] %vm144_vm0, %v584_v1  ;;  %146 = vst.msk [vmem:[#allocation2 + $0x18] sm:$0x7] %vm144_vm0, %v584_v1  ;;  %357 = vmatprep.subr.mxu0 %v584_v1  ;;  %504 = vmatprep.subr.mxu1 %v584_v1  ;;  %s502_s17 = sshll.u32 %s818_s10, 5  ;;  %vm153_vm1 = vcmask 130048  }
   0xd   : > { %147 = vst.msk [vmem:[#allocation2 + $0x13] sm:$0x7] %vm144_vm0, %v584_v1  ;;  %148 = vst.msk [vmem:[#allocation2 + $0x2b] sm:$0x7] %vm144_vm0, %v584_v1  ;;  %358 = vmatpush1.msra.mxu0 %v337_v0  ;;  %532 = vmatpush1.msra.mxu1 %v337_v0  ;;  %s138_s20 = scalar_lea.vmem %s815_s1, %s502_s17  ;;  %v334_v4 = vld [vmem:[%s814_s0 + $0x60] sm:$0xff]  ;;  %v333_v9 = vld [vmem:[%s814_s0 + $0x58] sm:$0xff] }
   0xe   : > { %359 = vmatprep.subr.mxu0 %v584_v1  ;;  %505 = vmatprep.subr.mxu1 %v584_v1  ;;  %v149_v5 = vld [vmem:[%s138_s20] sm:$0xff]  ;;  %v150_v6 = vld [vmem:[%s138_s20 + $0x8] sm:$0xff]  ;;  %v151_v7 = vld [vmem:[%s138_s20 + $0x10] sm:$0xff]  ;;  %vm172_vm2 = vcmask 261248   ;;  %vm185_vm3 = vcmask 392448   ;;  %vm198_vm4 = vcmask 523648  }
   0xf   : > { %360 = vmatpush1.msra.mxu0 %v336_v2  ;;  %533 = vmatpush1.msra.mxu1 %v336_v2  ;;  %154 = vst.msk [vmem:[#allocation2 + $0x3] sm:$0xff] %vm153_vm1, %v149_v5  ;;  %155 = vst.msk [vmem:[#allocation2 + $0xb] sm:$0xff] %vm153_vm1, %v150_v6  ;;  %v152_v8 = vld [vmem:[%s138_s20 + $0x18] sm:$0xff]  ;;  %v332_v10 = vld [vmem:[%s814_s0 + $0x50] sm:$0xff]  ;;  %s588_s20 = smov 64   ;;  %vm211_vm5 = vcmask 654848  }
  0x10   : > { %361 = vmatprep.subr.mxu0 %v584_v1  ;;  %506 = vmatprep.subr.mxu1 %v584_v1  ;;  %156 = vst.msk [vmem:[#allocation2 + $0x1b] sm:$0xff] %vm153_vm1, %v151_v7  ;;  %157 = vst.msk [vmem:[#allocation2 + $0x23] sm:$0xff] %vm153_vm1, %v152_v8  ;;  %v331_v11 = vld [vmem:[%s814_s0 + $0x48] sm:$0xff]  ;;  %v330_v14 = vld [vmem:[%s814_s0 + $0x40] sm:$0xff]  ;;  %vm224_vm6 = vcmask 786048   ;;  %vm237_vm7 = vcmask 917248  }
  0x11   : > { %362 = vmatpush1.msra.mxu0 %v335_v3  ;;  %534 = vmatpush1.msra.mxu1 %v335_v3  ;;  %v329_v23 = vld [vmem:[%s814_s0 + $0x38] sm:$0xff]  ;;  %v328_v24 = vld [vmem:[%s814_s0 + $0x30] sm:$0xff]  ;;  %v327_v27 = vld [vmem:[%s814_s0 + $0x28] sm:$0xff]  ;;  %vm251_vm8 = vcmask 1048448   ;;  %vm350_vm9 = vcmask 785408   ;;  %s503_s26 = sshll.u32 %s818_s10, 4 }
  0x12   : > { %363 = vmatprep.subr.mxu0 %v584_v1  ;;  %507 = vmatprep.subr.mxu1 %v584_v1  ;;  %v326_v30 = vld [vmem:[%s814_s0 + $0x20] sm:$0xff]  ;;  %v325_v31 = vld [vmem:[%s814_s0 + $0x18] sm:$0xff]  ;;  %v324_v34 = vld [vmem:[%s814_s0 + $0x10] sm:$0xff]  ;;  %s143_s29 = scalar_lea.vmem %s816_s2, %s503_s26 }
  0x13   : > { %364 = vmatpush1.msra.mxu0 %v334_v4  ;;  %535 = vmatpush1.msra.mxu1 %v334_v4  ;;  %v323_v37 = vld [vmem:[%s814_s0 + $0x8] sm:$0xff]  ;;  %v322_v38 = vld [vmem:[%s814_s0] sm:$0xff]  ;;  %v349_v41 = vld [vmem:[%s814_s0 + $0xd8] sm:$0xff] }
  0x14   : > { %365 = vmatprep.subr.mxu0 %v584_v1  ;;  %508 = vmatprep.subr.mxu1 %v584_v1  ;;  %v348_v44 = vld [vmem:[%s814_s0 + $0xd0] sm:$0xff]  ;;  %v347_v45 = vld [vmem:[%s814_s0 + $0xc8] sm:$0xff]  ;;  %v346_v48 = vld [vmem:[%s814_s0 + $0xc0] sm:$0xff] }
  0x15   : > { %366 = vmatpush1.msra.mxu0 %v333_v9  ;;  %536 = vmatpush1.msra.mxu1 %v333_v9  ;;  %v345_v51 = vld [vmem:[%s814_s0 + $0xb8] sm:$0xff]  ;;  %v344_v52 = vld [vmem:[%s814_s0 + $0xb0] sm:$0xff]  ;;  %v343_v55 = vld [vmem:[%s814_s0 + $0xa8] sm:$0xff] }
  0x16   : > { %367 = vmatprep.subr.mxu0 %v584_v1  ;;  %509 = vmatprep.subr.mxu1 %v584_v1  ;;  %v175_v12 = vld [vmem:[#allocation2 + $0x2] sm:$0xff]  ;;  %v176_v15 = vld [vmem:[#allocation2 + $0xa] sm:$0xff]  ;;  %v341_v57 = vld [vmem:[%s814_s0 + $0x98] sm:$0xff] }
  0x17   : > { %368 = vmatpush1.msra.mxu0 %v332_v10  ;;  %537 = vmatpush1.msra.mxu1 %v332_v10  ;;  %v162_v13 = vld [vmem:[#allocation2 + $0x1] sm:$0xff]  ;;  %v163_v16 = vld [vmem:[#allocation2 + $0x9] sm:$0xff]  ;;  %v254_v22 = vld [vmem:[#allocation2 + $0x19] sm:$0xff] }
  0x18   : > { %369 = vmatprep.subr.mxu0 %v584_v1  ;;  %510 = vmatprep.subr.mxu1 %v584_v1  ;;  %v259_v17 = vld [vmem:[#allocation2 + $0x22] sm:$0xff]  ;;  %v258_v18 = vld [vmem:[#allocation2 + $0x1a] sm:$0xff]  ;;  %v189_v25 = vld [vmem:[#allocation2 + $0xb] sm:$0xff]  ;;  %256 = vst.msk [vmem:[#allocation3 + $0x8] sm:$0xff] %vm153_vm1, %v254_v22 }
  0x19   : > { %370 = vmatpush1.msra.mxu0 %v331_v11  ;;  %538 = vmatpush1.msra.mxu1 %v331_v11  ;;  %v158_v19 = vld [vmem:[#allocation2] sm:$0xff]  ;;  %v159_v20 = vld [vmem:[#allocation2 + $0x8] sm:$0xff]  ;;  %v241_v54 = vld [vmem:[#allocation2 + $0x18] sm:$0xff] }
  0x1a   : > { %179 = vrot.lane.b32.xlu1 %v175_v12, %s585_s3  ;;  %166 = vrot.lane.b32.xlu0 %v162_v13, %s586_s4  ;;  %v255_v21 = vld [vmem:[#allocation2 + $0x21] sm:$0xff]  ;;  %160 = vst.msk [vmem:[#allocation3] sm:$0xff] %vm153_vm1, %v158_v19  ;;  %161 = vst.msk [vmem:[#allocation3 + $0x10] sm:$0xff] %vm153_vm1, %v159_v20  ;;  %v202_v32 = vld [vmem:[#allocation2 + $0xc] sm:$0xff] }
  0x1b   : > { %371 = vmatprep.subr.mxu0 %v584_v1  ;;  %511 = vmatprep.subr.mxu1 %v584_v1  ;;  %257 = vst.msk [vmem:[#allocation3 + $0x18] sm:$0xff] %vm153_vm1, %v255_v21  ;;  %v188_v26 = vld [vmem:[#allocation2 + $0x3] sm:$0xff]  ;;  %v270_v29 = vld [vmem:[#allocation2 + $0x1b] sm:$0xff]  ;;  %v215_v39 = vld [vmem:[#allocation2 + $0xd] sm:$0xff] }
  0x1c   : > { %372 = vmatpush1.msra.mxu0 %v330_v14  ;;  %539 = vmatpush1.msra.mxu1 %v330_v14  ;;  %v271_v28 = vld [vmem:[#allocation2 + $0x23] sm:$0xff]  ;;  %v228_v46 = vld [vmem:[#allocation2 + $0xe] sm:$0xff] }
  0x1d   : > { %373 = vmatprep.subr.mxu0 %v584_v1  ;;  %512 = vmatprep.subr.mxu1 %v584_v1  ;;  %v201_v33 = vld [vmem:[#allocation2 + $0x4] sm:$0xff]  ;;  %v282_v36 = vld [vmem:[#allocation2 + $0x1c] sm:$0xff]  ;;  %v340_v58 = vld [vmem:[%s814_s0 + $0x90] sm:$0xff] }
  0x1e   : > { %181 = vrot.lane.b32.xlu1 %v176_v15, %s585_s3  ;;  %168 = vrot.lane.b32.xlu0 %v163_v16, %s586_s4  ;;  %v283_v35 = vld [vmem:[#allocation2 + $0x24] sm:$0xff] }
  0x1f   : > { %374 = vmatpush1.msra.mxu0 %v329_v23  ;;  %540 = vmatpush1.msra.mxu1 %v329_v23  ;;  %v214_v40 = vld [vmem:[#allocation2 + $0x5] sm:$0xff]  ;;  %v294_v43 = vld [vmem:[#allocation2 + $0x1d] sm:$0xff] }
  0x20   : > { %375 = vmatprep.subr.mxu0 %v584_v1  ;;  %513 = vmatprep.subr.mxu1 %v584_v1  ;;  %v295_v42 = vld [vmem:[#allocation2 + $0x25] sm:$0xff] }
  0x21   : > { %376 = vmatpush1.msra.mxu0 %v328_v24  ;;  %541 = vmatpush1.msra.mxu1 %v328_v24  ;;  %v227_v47 = vld [vmem:[#allocation2 + $0x6] sm:$0xff]  ;;  %v306_v50 = vld [vmem:[#allocation2 + $0x1e] sm:$0xff] }
  0x22   : > { %264 = vrot.lane.b32.xlu1 %v259_v17, %s586_s4  ;;  %262 = vrot.lane.b32.xlu0 %v258_v18, %s586_s4  ;;  %v307_v49 = vld [vmem:[#allocation2 + $0x26] sm:$0xff] }
  0x23   : > { %377 = vmatprep.subr.mxu0 %v584_v1  ;;  %514 = vmatprep.subr.mxu1 %v584_v1  ;;  %v242_v53 = vld [vmem:[#allocation2 + $0x20] sm:$0xff]  ;;  %v339_v59 = vld [vmem:[%s814_s0 + $0x88] sm:$0xff] }
  0x24   : > { %378 = vmatpush1.msra.mxu0 %v327_v27  ;;  %542 = vmatpush1.msra.mxu1 %v327_v27  ;;  %v342_v56 = vld [vmem:[%s814_s0 + $0xa0] sm:$0xff] }
  0x25   : > { %379 = vmatprep.subr.mxu0 %v584_v1  ;;  %515 = vmatprep.subr.mxu1 %v584_v1  ;;  %v338_v60 = vld [vmem:[%s814_s0 + $0x80] sm:$0xff] }
  0x26   : > { %194 = vrot.lane.b32.xlu1 %v189_v25, %s587_s13  ;;  %192 = vrot.lane.b32.xlu0 %v188_v26, %s587_s13 }
  0x27   : > { %380 = vmatpush1.msra.mxu0 %v326_v30  ;;  %543 = vmatpush1.msra.mxu1 %v326_v30 }
  0x28   : > { %381 = vmatprep.subr.mxu0 %v584_v1  ;;  %516 = vmatprep.subr.mxu1 %v584_v1 }
  0x29   : > { %382 = vmatpush1.msra.mxu0 %v325_v31  ;;  %544 = vmatpush1.msra.mxu1 %v325_v31 }
  0x2a   : > { %276 = vrot.lane.b32.xlu1 %v271_v28, %s585_s3  ;;  %274 = vrot.lane.b32.xlu0 %v270_v29, %s585_s3 }
  0x2b   : > { %383 = vmatprep.subr.mxu0 %v584_v1  ;;  %517 = vmatprep.subr.mxu1 %v584_v1 }
  0x2c   : > { %384 = vmatpush1.msra.mxu0 %v324_v34  ;;  %545 = vmatpush1.msra.mxu1 %v324_v34 }
  0x2d   : > { %385 = vmatprep.subr.mxu0 %v584_v1  ;;  %518 = vmatprep.subr.mxu1 %v584_v1 }
  0x2e   : > { %207 = vrot.lane.b32.xlu1 %v202_v32, %s588_s20  ;;  %205 = vrot.lane.b32.xlu0 %v201_v33, %s588_s20 }
  0x2f   : > { %386 = vmatpush1.msra.mxu0 %v323_v37  ;;  %546 = vmatpush1.msra.mxu1 %v323_v37 }
  0x30   : > { %387 = vmatprep.subr.mxu0 %v584_v1  ;;  %519 = vmatprep.subr.mxu1 %v584_v1 }
  0x31   : > { %388 = vmatpush1.msra.mxu0 %v322_v38  ;;  %547 = vmatpush1.msra.mxu1 %v322_v38 }
  0x32   : > { %288 = vrot.lane.b32.xlu1 %v283_v35, %s587_s13  ;;  %286 = vrot.lane.b32.xlu0 %v282_v36, %s587_s13 }
  0x33   : > { %397 = vmatprep.subr.mxu0 %v584_v1  ;;  %520 = vmatprep.subr.mxu1 %v584_v1 }
  0x34   : > { %398 = vmatpush2.msra.mxu0 %v349_v41  ;;  %548 = vmatpush2.msra.mxu1 %v349_v41 }
  0x35   : > { %399 = vmatprep.subr.mxu0 %v584_v1  ;;  %521 = vmatprep.subr.mxu1 %v584_v1 }
  0x36   : > { %220 = vrot.lane.b32.xlu1 %v215_v39, %s589_s27  ;;  %218 = vrot.lane.b32.xlu0 %v214_v40, %s589_s27 }
  0x37   : > { %400 = vmatpush2.msra.mxu0 %v348_v44  ;;  %549 = vmatpush2.msra.mxu1 %v348_v44 }
  0x38   : > { %401 = vmatprep.subr.mxu0 %v584_v1  ;;  %522 = vmatprep.subr.mxu1 %v584_v1 }
  0x39   : > { %402 = vmatpush2.msra.mxu0 %v347_v45  ;;  %550 = vmatpush2.msra.mxu1 %v347_v45 }
  0x3a   : > { %300 = vrot.lane.b32.xlu1 %v295_v42, %s588_s20  ;;  %298 = vrot.lane.b32.xlu0 %v294_v43, %s588_s20 }
  0x3b   : > { %403 = vmatprep.subr.mxu0 %v584_v1  ;;  %523 = vmatprep.subr.mxu1 %v584_v1 }
  0x3c   : > { %404 = vmatpush2.msra.mxu0 %v346_v48  ;;  %551 = vmatpush2.msra.mxu1 %v346_v48 }
  0x3d   : > { %405 = vmatprep.subr.mxu0 %v584_v1  ;;  %524 = vmatprep.subr.mxu1 %v584_v1 }
  0x3e   : > { %233 = vrot.lane.b32.xlu1 %v228_v46, %s590_s6  ;;  %231 = vrot.lane.b32.xlu0 %v227_v47, %s590_s6 }
  0x3f   : > { %406 = vmatpush2.msra.mxu0 %v345_v51  ;;  %552 = vmatpush2.msra.mxu1 %v345_v51 }
  0x40   : > { %407 = vmatprep.subr.mxu0 %v584_v1  ;;  %525 = vmatprep.subr.mxu1 %v584_v1 }
  0x41   : > { %408 = vmatpush2.msra.mxu0 %v344_v52  ;;  %553 = vmatpush2.msra.mxu1 %v344_v52 }
  0x42   : > { %312 = vrot.lane.b32.xlu1 %v307_v49, %s589_s27  ;;  %310 = vrot.lane.b32.xlu0 %v306_v50, %s589_s27 }
  0x43   : > { %409 = vmatprep.subr.mxu0 %v584_v1  ;;  %526 = vmatprep.subr.mxu1 %v584_v1 }
  0x44   : > { %410 = vmatpush2.msra.mxu0 %v343_v55  ;;  %554 = vmatpush2.msra.mxu1 %v343_v55 }
  0x45   : > { %411 = vmatprep.subr.mxu0 %v584_v1  ;;  %527 = vmatprep.subr.mxu1 %v584_v1 }
  0x46   : > { %247 = vrot.lane.b32.xlu1 %v242_v53, %s591_s15  ;;  %245 = vrot.lane.b32.xlu0 %v241_v54, %s591_s15 }
  0x47   : > { %412 = vmatpush2.msra.mxu0 %v342_v56  ;;  %555 = vmatpush2.msra.mxu1 %v342_v56 }
  0x48   : > { %413 = vmatprep.subr.mxu0 %v584_v1  ;;  %528 = vmatprep.subr.mxu1 %v584_v1 }
  0x49   : > { %414 = vmatpush2.msra.mxu0 %v341_v57  ;;  %556 = vmatpush2.msra.mxu1 %v341_v57 }
  0x4a   : > { %415 = vmatprep.subr.mxu0 %v584_v1  ;;  %529 = vmatprep.subr.mxu1 %v584_v1 }
  0x4b   : > { %416 = vmatpush2.msra.mxu0 %v340_v58  ;;  %557 = vmatpush2.msra.mxu1 %v340_v58 }
  0x4c   : > { %417 = vmatprep.subr.mxu0 %v584_v1  ;;  %530 = vmatprep.subr.mxu1 %v584_v1 }
  0x4d   : > { %418 = vmatpush2.msra.mxu0 %v339_v59  ;;  %558 = vmatpush2.msra.mxu1 %v339_v59 }
  0x4e   : > { %419 = vmatprep.subr.mxu0 %v584_v1  ;;  %531 = vmatprep.subr.mxu1 %v584_v1 }
  0x4f   : > { %420 = vmatpush2.msra.mxu0 %v338_v60  ;;  %559 = vmatpush2.msra.mxu1 %v338_v60 }
  0x8c   : > { %v180_v61 = vpop.permute.xlu1 %179  ;;  %v167_v62 = vpop.permute.xlu0 %166 }
  0x8d   : > { %173 = vst.msk [vmem:[#allocation3] sm:$0xff] %vm172_vm2, %v167_v62 }
  0x8e   : > { %186 = vst.msk [vmem:[#allocation3] sm:$0xff] %vm185_vm3, %v180_v61 }
  0x90   : > { %v182_v63 = vpop.permute.xlu1 %181  ;;  %v169_v0 = vpop.permute.xlu0 %168 }
  0x91   : > { %174 = vst.msk [vmem:[#allocation3 + $0x10] sm:$0xff] %vm172_vm2, %v169_v0 }
  0x92   : > { %187 = vst.msk [vmem:[#allocation3 + $0x10] sm:$0xff] %vm185_vm3, %v182_v63 }
  0x94   : > { %v265_v2 = vpop.permute.xlu1 %264  ;;  %v263_v3 = vpop.permute.xlu0 %262 }
  0x95   : > { %269 = vst.msk [vmem:[#allocation3 + $0x18] sm:$0xff] %vm172_vm2, %v265_v2  ;;  %268 = vst.msk [vmem:[#allocation3 + $0x8] sm:$0xff] %vm172_vm2, %v263_v3 }
  0x98   : > { %v195_v1 = vpop.permute.xlu1 %194  ;;  %v193_v4 = vpop.permute.xlu0 %192 }
  0x99   : > { %200 = vst.msk [vmem:[#allocation3 + $0x10] sm:$0xff] %vm198_vm4, %v195_v1  ;;  %199 = vst.msk [vmem:[#allocation3] sm:$0xff] %vm198_vm4, %v193_v4 }
  0x9c   : > { %v277_v5 = vpop.permute.xlu1 %276  ;;  %v275_v6 = vpop.permute.xlu0 %274 }
  0x9d   : > { %281 = vst.msk [vmem:[#allocation3 + $0x18] sm:$0xff] %vm185_vm3, %v277_v5  ;;  %280 = vst.msk [vmem:[#allocation3 + $0x8] sm:$0xff] %vm185_vm3, %v275_v6 }
  0xa0   : > { %v208_v7 = vpop.permute.xlu1 %207  ;;  %v206_v8 = vpop.permute.xlu0 %205 }
  0xa1   : > { %213 = vst.msk [vmem:[#allocation3 + $0x10] sm:$0xff] %vm211_vm5, %v208_v7  ;;  %212 = vst.msk [vmem:[#allocation3] sm:$0xff] %vm211_vm5, %v206_v8 }
  0xa4   : > { %v289_v9 = vpop.permute.xlu1 %288  ;;  %v287_v10 = vpop.permute.xlu0 %286 }
  0xa5   : > { %293 = vst.msk [vmem:[#allocation3 + $0x18] sm:$0xff] %vm198_vm4, %v289_v9  ;;  %292 = vst.msk [vmem:[#allocation3 + $0x8] sm:$0xff] %vm198_vm4, %v287_v10 }
  0xa8   : > { %v221_v11 = vpop.permute.xlu1 %220  ;;  %v219_v12 = vpop.permute.xlu0 %218 }
  0xa9   : > { %226 = vst.msk [vmem:[#allocation3 + $0x10] sm:$0xff] %vm224_vm6, %v221_v11  ;;  %225 = vst.msk [vmem:[#allocation3] sm:$0xff] %vm224_vm6, %v219_v12 }
  0xac   : > { %v301_v13 = vpop.permute.xlu1 %300  ;;  %v299_v14 = vpop.permute.xlu0 %298 }
  0xad   : > { %305 = vst.msk [vmem:[#allocation3 + $0x18] sm:$0xff] %vm211_vm5, %v301_v13  ;;  %304 = vst.msk [vmem:[#allocation3 + $0x8] sm:$0xff] %vm211_vm5, %v299_v14 }
  0xb0   : > { %v234_v15 = vpop.permute.xlu1 %233  ;;  %v232_v16 = vpop.permute.xlu0 %231 }
  0xb1   : > { %239 = vst.msk [vmem:[#allocation3 + $0x10] sm:$0xff] %vm237_vm7, %v234_v15  ;;  %238 = vst.msk [vmem:[#allocation3] sm:$0xff] %vm237_vm7, %v232_v16 }
  0xb4   : > { %v313_v17 = vpop.permute.xlu1 %312  ;;  %v311_v18 = vpop.permute.xlu0 %310 }
  0xb5   : > { %317 = vst.msk [vmem:[#allocation3 + $0x18] sm:$0xff] %vm224_vm6, %v313_v17  ;;  %316 = vst.msk [vmem:[#allocation3 + $0x8] sm:$0xff] %vm224_vm6, %v311_v18 }
  0xb8   : > { %v248_v19 = vpop.permute.xlu1 %247  ;;  %v246_v20 = vpop.permute.xlu0 %245 }
  0xb9   : > { %253 = vst.msk [vmem:[#allocation3 + $0x10] sm:$0xff] %vm251_vm8, %v248_v19  ;;  %252 = vst.msk [vmem:[#allocation3] sm:$0xff] %vm251_vm8, %v246_v20 }
  0xbc   : > { %v319_v21 = vld [vmem:[#allocation3 + $0x8] sm:$0xff]  ;;  %v321_v22 = vld [vmem:[#allocation3 + $0x18] sm:$0xff] }
  0xbd   : > { %498 = vmatprep.mubr.msk.f32.mxu0 %vm350_vm9, %v319_v21  ;;  %499 = vmatprep.mubr.msk.f32.mxu1 %vm350_vm9, %v321_v22 }
  0xc0   : > { %v318_v23 = vld [vmem:[#allocation3] sm:$0xff]  ;;  %v320_v24 = vld [vmem:[#allocation3 + $0x10] sm:$0xff] }
  0xc1   : > { %422 = vmatmul.mubr.f32.vlgmr.msra.gmra.mxu0 %v318_v23  ;;  %427 = vmatmul.mubr.f32.vlgmr.msra.gmra.mxu1 %v320_v24 }
 0x181   : > { %v423_v25 = vpop.f32.mrf.mxu0  ;;  %v428_v26 = vpop.f32.mrf.mxu1 }
 0x182   : > { %432 = vst.msk [vmem:[%s143_s29] sm:$0xff] %vm153_vm1, %v423_v25  ;;  %433 = vst.msk [vmem:[%s143_s29 + $0x8] sm:$0xff] %vm153_vm1, %v428_v26 }
 0x183   : > { %v425_v27 = vpop.f32.mrf.mxu0  ;;  %v430_v28 = vpop.f32.mrf.mxu1 }
 0x184 PF: > { %s12_s9 = sadd.s32 1, %s582_s9  }
 0x185   : > { %p9_p4 = scmp.ge.s32.totalorder %s12_s9, 4  }
 0x187   :  { %11 = sbr.rel (!%p9_p4) target bundleno = 1 (0x1), region = 59 }

// kernel: spatial_gate.5
= control target key start
LH: loop header
LB: loop body
LE: loop exit
PB: predicated region body
PF: predicated region fallthrough
CT: control target
= control target key end

     0   :  { %s486_s9 = smov 0   ;;  %s488_s10 = smov 0   ;;  %s522_s0 = inlined_call_operand.vmem [shape: f32[2,1,256], index: 0, kind: input, shape index: {}]   ;;  %s523_s1 = inlined_call_operand.vmem [shape: f32[2,4,256], index: 1, kind: input, shape index: {}]   ;;  %s524_s2 = inlined_call_operand.vmem [shape: f32[2,4,256], index: 2, kind: output, shape index: {}]  }
   0x1   :  { %s490_s11 = smov 0  }
   0x2 LB: > { %s31_s12 = sadd.s32 1, %s465_s10  ;;  %p409_p0 = scmp.ge.s32.totalorder %s469_s11, 1  ;;  %s469_s11 = sphi %s490_s11, %s12_s11   ;;  %s465_s10 = sphi %s488_s10, %s526_s10   ;;  %s461_s9 = sphi %s486_s9, %s525_s9  }
   0x3   : > { %p33_p1 = scmp.ge.s32.totalorder %s31_s12, 2  ;;  %p164_p2 = scmp.lt.s32.totalorder %s469_s11, 3 }
   0x5   : > { %s528_s12 = smov (%p33_p1, %s31_s12), 0  ;;  %p165_p3 = pnand %p409_p0, %p164_p2 }
   0x6   : > { %p211_p4 = scmp.lt.s32.totalorder (!%p165_p3), %s461_s9, 1 }
   0x7   : > { %168 = sbr.rel (%p165_p3) target bundleno = 65 (0x41), region = 28 }
   0xc   : > { %s530_s9 = smov (!%p211_p4, %s461_s9), 1  ;;  %v258_v5 = vlaneseq }
   0xd   : > { %s410_s13 = sshll.u32 %s530_s9, 1  ;;  %s417_s17 = sshll.u32 %s530_s9, 3 }
   0xe   : > { %s217_s16 = scalar_lea.vmem %s522_s0, %s410_s13  ;;  %vm260_vm0 = vcmp.lt.s32.totalorder %v258_v5, 256  ;;  %v267_v7 = vshrl.u32 %v258_v5, 7  ;;  %s231_s20 = scalar_lea.vmem %s523_s1, %s417_s17 }
   0xf   : > { %v251_v0 = vld [vmem:[%s217_s16] sm:$0x3]  ;;  %s245_s23 = scalar_lea.vmem %s524_s2, %s417_s17 }
  0x10   : > { %v252_v1 = vsub.f32 0.0, %v251_v0  ;;  %v268_v8 = vsub.s32 0, %v267_v7  ;;  %v272_v9 = vsub.s32 1, %v267_v7  ;;  %v263_v13 = vld [vmem:[%s231_s20] sm:$0xff] }
  0x12   : > { %v253_v2 = vmul.f32 1.442695, %v252_v1 }
  0x14   : > { %443 = vpow2.f32 %v253_v2 }
  0x21   : > { %v444_v3 = vpop.eup %443 }
  0x22   : > { %v255_v4 = vadd.f32 1.0, %v444_v3 }
  0x24   : > { %445 = vrcp.f32 %v255_v4 }
  0x31   : > { %v446_v6 = vpop.eup %445 }
  0x32   : > { %262 = vst.msk [vmem:[#allocation2] sm:$0x3] %vm260_vm0, %v446_v6 }
  0x39   : > { %v264_v10 = vld [vmem:[#allocation2] sm:$0x3] }
  0x3a   : > { %v269_v11 = vrot.slane %v264_v10, %v268_v8  ;;  %v273_v12 = vrot.slane %v264_v10, %v272_v9 }
  0x3c   : > { %v274_v14 = vcombine.low %v269_v11, %v273_v12 }
  0x3e   : > { %v276_v15 = vmul.f32 %v274_v14, %v263_v13 }
  0x40   : > { %277 = vst [vmem:[%s245_s23] sm:$0xff] %v276_v15 }
  0x41 PF: > { %s12_s11 = sadd.s32 1, %s469_s11   ;;  %s525_s9 = smov %s465_s10 }
  0x42   : > { %p9_p5 = scmp.ge.s32.totalorder %s12_s11, 4   ;;  %s526_s10 = smov %s528_s12 }
  0x44   :  { %11 = sbr.rel (!%p9_p5) target bundleno = 2 (0x2), region = 65 }

</bundles_post_ra>
